<compile_context>
chip_gen: v6e
topology: v6e:2x2x1
jax: 0.10.0
libtpu: 0.0.40
codegen_flags: <defaults>
</compile_context>

<pallas_src>
import jax
import jax.numpy as jnp
from jax import lax
from jax.experimental import pallas as pl
from jax.experimental.pallas import tpu as pltpu


def _self_attention_kernel(x_ref, wf_ref, bf_ref, o_ref, proj_ref):
    """Per-(batch, q-tile) self-attention in channels-first layout.

    x_ref    : (1, C, N)     full input block for this batch (N = W*H on lanes)
    wf_ref   : (Ctot, C)     fused weights [Wq; 0pad; Wk; 0pad; Wv; ones-row(0)]
    bf_ref   : (Ctot, 1)     fused bias    [bq; 0   ; bk; 0   ; bv; 1         ]
    o_ref    : (1, C, TQ)    output tile (residual already added)
    proj_ref : (Ctot, N)     VMEM scratch holding the fused projection,
                             computed once per batch at q-tile 0.
    """
    qi = pl.program_id(1)
    C = x_ref.shape[1]
    N = x_ref.shape[2]
    TQ = o_ref.shape[2]
    Ctot = wf_ref.shape[0]
    C8p = (Ctot - C - 1) // 2          # padded Q/K channel dim

    # Fused Q/K/V (+ ones-row) projection, once per batch.
    @pl.when(qi == 0)
    def _():
        x_full = x_ref[0].astype(jnp.float32)                      # (C, N)
        proj_ref[...] = (
            jnp.dot(wf_ref[...].astype(jnp.float32), x_full,
                    preferred_element_type=jnp.float32)
            + bf_ref[...].astype(jnp.float32))                     # (Ctot, N)

    q_start = pl.multiple_of(qi * TQ, TQ)
    q_tile = proj_ref[:C8p, pl.ds(q_start, TQ)]                    # (C8p, TQ)
    k = proj_ref[C8p:2 * C8p, :]                                   # (C8p, N)
    v_aug = proj_ref[2 * C8p:, :]                                  # (C+1, N), last row == 1

    # energy[i, j] = sum_d q[d, i] * k[d, j]  -- TN contraction over the
    # channel/sublane dim; no lane-sparse q.T temporary is materialized.
    energy = lax.dot_general(q_tile, k, (((0,), (0,)), ((), ())),
                             preferred_element_type=jnp.float32)   # (TQ, N)

    # Unnormalized, numerically-stable softmax numerator.
    m = jnp.max(energy, axis=-1, keepdims=True)                    # (TQ, 1)
    p = jnp.exp(energy - m)                                        # (TQ, N)

    # out_aug[c, i] = sum_j v_aug[c, j] * p[i, j]  -- NT dot_general.  The
    # appended ones-row yields l[i] = sum_j p[i, j] in the last output row,
    # already lane-oriented, so normalization is deferred past the matmul.
    out_aug = lax.dot_general(v_aug, p, (((1,), (1,)), ((), ())),
                              preferred_element_type=jnp.float32)  # (C+1, TQ)
    out = out_aug[:C]                                              # (C, TQ)
    l_row = out_aug[C:C + 1]                                       # (1, TQ)
    inv_l = pl.reciprocal(l_row, approx=False)   # exact: keeps 1e-4 tolerance

    # Residual add with the matching x columns, then store lane-dense.
    x_tile = x_ref[0, :, pl.ds(q_start, TQ)].astype(jnp.float32)   # (C, TQ)
    o_ref[0] = (out * inv_l + x_tile).astype(o_ref.dtype)


def _pick_tq(n):
    """Largest convenient query tile that divides N with >= 2 tiles."""
    for tq in (512, 256, 128):
        if n % tq == 0 and n // tq >= 2:
            return tq
    return n


def self_attention(x_nchw, wq, bq, wk, bk, wv, bv):
    """x_nchw: (B, C, W, H). Conv2d(k=1) weights passed as (out, in). Returns NCHW."""
    B, C, W, H = x_nchw.shape
    N = W * H
    C8 = wq.shape[0]
    TQ = _pick_tq(N)
    NQ = N // TQ

    # Pad Q/K projection rows to a sublane-aligned count (zero rows are inert)
    # and append a zero-weight / bias-1 row whose projection is identically 1;
    # it turns the AV matmul's last row into the softmax denominator l.
    C8p = ((C8 + 7) // 8) * 8
    pad = C8p - C8
    zw = jnp.zeros((pad, C), dtype=wq.dtype)
    zb = jnp.zeros((pad,), dtype=bq.dtype)
    ones_w = jnp.zeros((1, C), dtype=wv.dtype)
    ones_b = jnp.ones((1,), dtype=bv.dtype)
    w_fused = jnp.concatenate([wq, zw, wk, zw, wv, ones_w], axis=0)    # (Ctot, C)
    b_fused = jnp.concatenate([bq, zb, bk, zb, bv, ones_b],
                              axis=0).reshape(-1, 1)                   # (Ctot, 1)
    Ctot = 2 * C8p + C + 1

    # Channels-first layout: (B, C, N) is a free, contiguous view of NCHW.
    x_bcn = x_nchw.reshape(B, C, N)

    flops = B * (2 * Ctot * C * N + 2 * N * N * C8p + 2 * N * N * (C + 1))
    bytes_accessed = 4 * (2 * B * C * N + Ctot * C + Ctot)
    cost = pl.CostEstimate(flops=flops, transcendentals=B * N * N,
                           bytes_accessed=bytes_accessed)

    # Generation-aware VMEM cap (85% of physical, never the full budget).
    try:
        vmem_cap = int(pltpu.get_tpu_info().vmem_capacity_bytes)
    except Exception:
        vmem_cap = 128 * 1024 * 1024
    per_step = 4 * (
        2 * C * N                  # x block (double-buffered)
        + 2 * C * TQ               # out block (double-buffered)
        + 2 * (Ctot * C + Ctot)    # weights + bias
        + Ctot * N                 # resident projection scratch
        + 2 * TQ * N               # energy + p temporaries
        + (C + 3) * TQ)            # out_aug, m, inv_l
    vmem_limit = int(min(max(2 * per_step, 16 * 1024 * 1024),
                         int(0.85 * vmem_cap)))
    # TODO(synk): if K/V themselves (Ctot*N) outgrow VMEM for very large W*H,
    # add a kv-tile axis with an online-softmax (flash) accumulator.

    out_bcn = pl.pallas_call(
        _self_attention_kernel,
        out_shape=jax.ShapeDtypeStruct((B, C, N), x_nchw.dtype),
        grid_spec=pltpu.PrefetchScalarGridSpec(
            num_scalar_prefetch=0,
            grid=(B, NQ),
            in_specs=[
                pl.BlockSpec((1, C, N), lambda b, qi: (b, 0, 0)),     # x, per batch
                pl.BlockSpec((Ctot, C), lambda b, qi: (0, 0)),        # fused weights
                pl.BlockSpec((Ctot, 1), lambda b, qi: (0, 0)),        # fused bias
            ],
            out_specs=pl.BlockSpec((1, C, TQ), lambda b, qi: (b, 0, qi)),
            scratch_shapes=[pltpu.VMEM((Ctot, N), jnp.float32)],
        ),
        compiler_params=pltpu.CompilerParams(
            dimension_semantics=("parallel", "arbitrary"),
            vmem_limit_bytes=vmem_limit),
        cost_estimate=cost,
    )(x_bcn, w_fused, b_fused)

    return out_bcn.reshape(B, C, W, H)


def reference(x, wq, bq, wk, bk, wv, bv):
    """Pure-JAX replica of the PyTorch forward, for verification."""
    B, C, W, H = x.shape
    N = W * H
    xf = x.reshape(B, C, N)                                     # (B, C, N)
    q = jnp.einsum('oc,bcn->bon', wq, xf) + bq[None, :, None]   # (B, C8, N)
    k = jnp.einsum('oc,bcn->bon', wk, xf) + bk[None, :, None]
    v = jnp.einsum('oc,bcn->bon', wv, xf) + bv[None, :, None]   # (B, C, N)
    energy = jnp.einsum('bdi,bdj->bij', q, k)                   # (B, N, N)
    attn = jax.nn.softmax(energy, axis=-1)
    out = jnp.einsum('bcj,bij->bci', v, attn)                   # (B, C, N)
    return out.reshape(B, C, W, H) + x


if __name__ == "__main__":
    B, C, W, H = 2, 16, 16, 16          # in_dim=16 -> in_dim//8 = 2, N = 256
    C8 = C // 8

    key = jax.random.PRNGKey(0)
    k_x, k_wq, k_bq, k_wk, k_bk, k_wv, k_bv = jax.random.split(key, 7)

    x = jax.random.normal(k_x, (B, C, W, H), dtype=jnp.float32)
    # Conv2d(kernel_size=1) weights: (out, in, 1, 1) -> stored as (out, in)
    wq = jax.random.normal(k_wq, (C8, C), dtype=jnp.float32) * 0.1
    bq = jax.random.normal(k_bq, (C8,), dtype=jnp.float32) * 0.1
    wk = jax.random.normal(k_wk, (C8, C), dtype=jnp.float32) * 0.1
    bk = jax.random.normal(k_bk, (C8,), dtype=jnp.float32) * 0.1
    wv = jax.random.normal(k_wv, (C, C), dtype=jnp.float32) * 0.1
    bv = jax.random.normal(k_bv, (C,), dtype=jnp.float32) * 0.1

    out = self_attention(x, wq, bq, wk, bk, wv, bv)
    out = jax.block_until_ready(out)

    ref = jax.block_until_ready(reference(x, wq, bq, wk, bk, wv, bv))
    assert out.shape == (B, C, W, H)
    assert jnp.allclose(out, ref, atol=1e-4, rtol=1e-4), "mismatch vs reference"

    print("KERNEL_OK")
</pallas_src>

<mosaic_0001>
module attributes {stable_mosaic.version = 11 : i64} {
  func.func @_self_attention_kernel(%arg0: i32, %arg1: i32, %arg2: memref<1x16x256xf32, #tpu.memory_space<vmem>>, %arg3: memref<33x16xf32, #tpu.memory_space<vmem>>, %arg4: memref<33x1xf32, #tpu.memory_space<vmem>>, %arg5: memref<1x16x128xf32, #tpu.memory_space<vmem>>, %arg6: memref<33x256xf32, #tpu.memory_space<vmem>>) attributes {dimension_semantics = [#tpu.dimension_semantics<parallel>, #tpu.dimension_semantics<arbitrary>], iteration_bounds = array<i64: 2, 2>, scalar_prefetch = 0 : i64, scratch_operands = 1 : i64, tpu.core_type = #tpu.core_type<tc>, window_params = [{transform_indices = @transform_0, window_bounds = array<i64: 1, 16, 256>}, {pipeline_mode = #tpu.pipeline_mode<synchronous>, transform_indices = @transform_1, window_bounds = array<i64: 33, 16>}, {pipeline_mode = #tpu.pipeline_mode<synchronous>, transform_indices = @transform_2, window_bounds = array<i64: 33, 1>}, {transform_indices = @transform_3, window_bounds = array<i64: 1, 16, 128>}]} {
    %c0_i32 = arith.constant 0 : i32
    %0 = arith.cmpi eq, %arg1, %c0_i32 : i32
    %1 = arith.extui %0 : i1 to i32
    %c0_i32_0 = arith.constant 0 : i32
    %2 = arith.cmpi ne, %1, %c0_i32_0 : i32
    scf.if %2 {
      %c0_10 = arith.constant 0 : index
      %c0_11 = arith.constant 0 : index
      %c0_12 = arith.constant 0 : index
      %28 = vector.load %arg2[%c0_10, %c0_11, %c0_12] : memref<1x16x256xf32, #tpu.memory_space<vmem>>, vector<1x16x256xf32>
      %29 = vector.shape_cast %28 : vector<1x16x256xf32> to vector<16x256xf32>
      %c0_13 = arith.constant 0 : index
      %c0_14 = arith.constant 0 : index
      %30 = vector.load %arg3[%c0_13, %c0_14] : memref<33x16xf32, #tpu.memory_space<vmem>>, vector<33x16xf32>
      %cst_15 = arith.constant dense<0.000000e+00> : vector<33x256xf32>
      %31 = tpu.matmul %30, %29, %cst_15 {dimension_numbers = #tpu.dot_dimension_numbers<[1], [0], [0], [1], [0, 0, 1, 1], [], []>} : vector<33x16xf32>, vector<16x256xf32>, vector<33x256xf32> -> vector<33x256xf32>
      %c0_16 = arith.constant 0 : index
      %c0_17 = arith.constant 0 : index
      %32 = vector.load %arg4[%c0_16, %c0_17] : memref<33x1xf32, #tpu.memory_space<vmem>>, vector<33x1xf32>
      %33 = vector.broadcast %32 : vector<33x1xf32> to vector<33x256xf32>
      %34 = arith.addf %31, %33 : vector<33x256xf32>
      %c0_18 = arith.constant 0 : index
      %c0_19 = arith.constant 0 : index
      %35 = vector.load %arg6[%c0_18, %c0_19] : memref<33x256xf32, #tpu.memory_space<vmem>>, vector<33x256xf32>
      tpu.vector_store %arg6[%c0_18, %c0_19], %34 {strides = array<i32>} : memref<33x256xf32, #tpu.memory_space<vmem>>, vector<33x256xf32>,
    } else {
    }
    %c128_i32 = arith.constant 128 : i32
    %3 = arith.muli %arg1, %c128_i32 : i32
    %4 = tpu.assume_multiple %3, 128 : i32
    %c0 = arith.constant 0 : index
    %5 = arith.index_cast %4 : i32 to index
    %6 = vector.load %arg6[%c0, %5] : memref<33x256xf32, #tpu.memory_space<vmem>>, vector<8x128xf32>
    %c8 = arith.constant 8 : index
    %c0_1 = arith.constant 0 : index
    %7 = vector.load %arg6[%c8, %c0_1] : memref<33x256xf32, #tpu.memory_space<vmem>>, vector<8x256xf32>
    %c16 = arith.constant 16 : index
    %c0_2 = arith.constant 0 : index
    %8 = vector.load %arg6[%c16, %c0_2] : memref<33x256xf32, #tpu.memory_space<vmem>>, vector<17x256xf32>
    %cst = arith.constant dense<0.000000e+00> : vector<128x256xf32>
    %9 = tpu.matmul %6, %7, %cst {dimension_numbers = #tpu.dot_dimension_numbers<[0], [0], [1], [1], [0, 1, 1, 1], [], []>} : vector<8x128xf32>, vector<8x256xf32>, vector<128x256xf32> -> vector<128x256xf32>
    %cst_3 = arith.constant dense<0xFF800000> : vector<128xf32>
    %10 = vector.multi_reduction <maximumf>, %9, %cst_3 [1] : vector<128x256xf32> to vector<128xf32>
    %11 = vector.shape_cast %10 : vector<128xf32> to vector<128x1xf32>
    %12 = vector.broadcast %11 : vector<128x1xf32> to vector<128x256xf32>
    %13 = arith.subf %9, %12 : vector<128x256xf32>
    %14 = math.exp %13 : vector<128x256xf32>
    %cst_4 = arith.constant dense<0.000000e+00> : vector<17x128xf32>
    %15 = tpu.matmul %8, %14, %cst_4 {dimension_numbers = #tpu.dot_dimension_numbers<[1], [1], [0], [0], [0, 0, 1, 0], [], []>} : vector<17x256xf32>, vector<128x256xf32>, vector<17x128xf32> -> vector<17x128xf32>
    %16 = vector.extract_strided_slice %15 {offsets = [0, 0], sizes = [16, 128], strides = [1, 1]} : vector<17x128xf32> to vector<16x128xf32>
    %17 = vector.extract_strided_slice %15 {offsets = [16, 0], sizes = [1, 128], strides = [1, 1]} : vector<17x128xf32> to vector<1x128xf32>
    %18 = tpu.reciprocal %17 : vector<1x128xf32> -> vector<1x128xf32>
    %c0_5 = arith.constant 0 : index
    %c0_6 = arith.constant 0 : index
    %19 = arith.index_cast %4 : i32 to index
    %20 = vector.load %arg2[%c0_5, %c0_6, %19] : memref<1x16x256xf32, #tpu.memory_space<vmem>>, vector<1x16x128xf32>
    %21 = vector.shape_cast %20 : vector<1x16x128xf32> to vector<16x128xf32>
    %22 = vector.broadcast %18 : vector<1x128xf32> to vector<16x128xf32>
    %23 = arith.mulf %16, %22 : vector<16x128xf32>
    %24 = arith.addf %23, %21 : vector<16x128xf32>
    %c0_7 = arith.constant 0 : index
    %c0_8 = arith.constant 0 : index
    %c0_9 = arith.constant 0 : index
    %25 = vector.load %arg5[%c0_7, %c0_8, %c0_9] : memref<1x16x128xf32, #tpu.memory_space<vmem>>, vector<1x16x128xf32>
    %26 = vector.shape_cast %25 : vector<1x16x128xf32> to vector<16x128xf32>
    %27 = vector.shape_cast %24 : vector<16x128xf32> to vector<1x16x128xf32>
    tpu.vector_store %arg5[%c0_7, %c0_8, %c0_9], %27 {strides = array<i32>} : memref<1x16x128xf32, #tpu.memory_space<vmem>>, vector<1x16x128xf32>,
    return
  }
  func.func @transform_0(%arg0: i32, %arg1: i32) -> (i32, i32, i32) {
    %c0_i32 = arith.constant 0 : i32
    %c0_i32_0 = arith.constant 0 : i32
    %c0_i32_1 = arith.constant 0 : i32
    return %arg0, %c0_i32, %c0_i32_0 : i32, i32, i32
  }
  func.func @transform_1(%arg0: i32, %arg1: i32) -> (i32, i32) {
    %c0_i32 = arith.constant 0 : i32
    %c0_i32_0 = arith.constant 0 : i32
    %c0_i32_1 = arith.constant 0 : i32
    return %c0_i32, %c0_i32_0 : i32, i32
  }
  func.func @transform_2(%arg0: i32, %arg1: i32) -> (i32, i32) {
    %c0_i32 = arith.constant 0 : i32
    %c0_i32_0 = arith.constant 0 : i32
    %c0_i32_1 = arith.constant 0 : i32
    return %c0_i32, %c0_i32_0 : i32, i32
  }
  func.func @transform_3(%arg0: i32, %arg1: i32) -> (i32, i32, i32) {
    %c0_i32 = arith.constant 0 : i32
    %c0_i32_0 = arith.constant 0 : i32
    return %arg0, %c0_i32, %arg1 : i32, i32, i32
  }
}

</mosaic_0001>

<bundles_post_ra>
// kernel: tpu_custom_call.1
= control target key start
LH: loop header
LB: loop body
LE: loop exit
PB: predicated region body
PF: predicated region fallthrough
CT: control target
= control target key end

     0   :  { %8 = vsyncpa [#allocation4], 0  ;;  %s1598_s0 = inlined_call_operand.vmem [shape: f32[2,16,256], index: 0, kind: input, shape index: {}]   ;;  %s1599_s1 = inlined_call_operand.vmem [shape: f32[33,16], index: 1, kind: input, shape index: {}]   ;;  %s1600_s2 = inlined_call_operand.vmem [shape: f32[33,1], index: 2, kind: input, shape index: {}]   ;;  %s1601_s3 = inlined_call_operand.hbm [shape: f32[2,16,256], index: 3, kind: output, shape index: {}]  }
   0x1   :  { %10 = vsyncpa [#allocation4 + $0x1], 0  ;;  %s1277_s12 = smov 0   ;;  %s1279_s13 = smov 0  }
   0x2   :  { %s1281_s14 = smov 0   ;;  %s1283_s15 = smov 0  }
   0x3   :  { %s1285_s16 = smov 0   ;;  %s1287_s17 = smov 0  }
   0x4   :  { %s1289_s18 = smov 0   ;;  %s1291_s19 = smov 0  }
   0x5 LB: > { %s936_s20 = sadd.s32 4294967295, %s1248_s19   ;;  %s937_s21 = sadd.s32 4294967294, %s1248_s19   ;;  %s1248_s19 = sphi %s1291_s19, %s16_s19   ;;  %s1244_s18 = sphi %s1289_s18, %s1610_s18   ;;  %s1240_s17 = sphi %s1287_s17, %s1609_s17   ;;  %s1236_s16 = sphi %s1285_s16, %s1608_s16   ;;  %s1232_s15 = sphi %s1283_s15, %s1607_s15   ;;  %s1228_s14 = sphi %s1281_s14, %s1606_s14   ;;  %s1224_s13 = sphi %s1279_s13, %s1605_s13   ;;  %s1220_s12 = sphi %s1277_s12, %s1604_s12  }
   0x6   : > { %s25_s22 = sadd.s32 1, %s1240_s17  ;;  %s28_s23 = sadd.s32 1, %s1244_s18 }
   0x7   : > { %p26_p0 = scmp.ge.s32.totalorder %s25_s22, 2  ;;  %p115_p1 = scmp.ne.s32.totalorder %s1228_s14, %s1224_s13 }
   0x8   : > { %p116_p2 = scmp.eq.s32.totalorder %s936_s20, 3  ;;  %p121_p5 = scmp.ne.s32.totalorder %s1224_s13, %s1220_s12 }
   0x9   : > { %s1612_s22 = smov (%p26_p0, %s25_s22), 0  ;;  %s1614_s23 = smov (!%p26_p0, %s28_s23), %s1244_s18 }
   0xa   : > { %s101_s24 = ssub.s32 %s1240_s17, %s1612_s22  ;;  %p1328_p3 = por %p116_p2, %p115_p1 }
   0xb   : > { %p30_p4 = scmp.ge.s32.totalorder %s1614_s23, 2  ;;  %p122_p6 = scmp.eq.s32.totalorder %s937_s21, 3 }
   0xc   : > { %p940_p7 = scmp.ge.s32.totalorder %s1248_s19, 1  ;;  %p154_p9 = scmp.lt.s32.totalorder %s1248_s19, 5 }
   0xd   : > { %s1616_s23 = smov (%p30_p4, %s1614_s23), 0  ;;  %p1337_p8 = por %p122_p6, %p121_p5 }
   0xe   : > { %s100_s27 = ssub.s32 %s1244_s18, %s1616_s23  ;;  %s105_s28 = sadd.s32 1, %s1228_s14 }
   0xf   : > { %s102_s29 = sor.u32 %s101_s24, %s100_s27  ;;  %p155_p10 = pnand %p940_p7, %p154_p9 }
  0x10   : > { %p103_p11 = scmp.eq.s32.totalorder %s102_s29, 0  ;;  %s175_s4 = sand.u32 (!%p155_p10), 1, %s1224_s13  }
  0x11   : > { %158 = sbr.rel (%p155_p10) target bundleno = 1082 (0x43a), region = 32  ;;  %p178_p12 = scmp.lt.s32.totalorder (!%p155_p10), %s1236_s16, 1 }
  0x12   : > { %s1346_s30 = scalar_select %p103_p11, %s1228_s14, %s105_s28  }
  0x13   : > { %s941_s5 = sshll.u32 (!%p155_p10), %s175_s4, 4  ;;  %p944_p13 = scmp.ne.s32.totalorder (!%p155_p10), %s1232_s15, 0 }
  0x14   : > { %s1358_s11 = scalar_lea.vmem (!%p155_p10), [#allocation3], %s941_s5 }
  0x16   : > { %s179_s6 = scalar_select %p178_p12, %s1236_s16, 1 }
  0x17   : > { %186 = sbr.rel (%p944_p13) target bundleno = 240 (0xf0), region = 36 }
  0x18   : > { %s974_s7 = sshll.u32 %s179_s6, 5 }
  0x19   : > { %s1356_s10 = scalar_lea.vmem %s1598_s0, %s974_s7 }
  0x1c   : > { %v190_v0 = vld [vmem:[%s1356_s10 + $0x18] sm:$0xff]  ;;  %v189_v1 = vld [vmem:[%s1356_s10 + $0x10] sm:$0xff]  ;;  %v188_v2 = vld [vmem:[%s1356_s10 + $0x8] sm:$0xff]  ;;  %vm226_vm0 = vcmask 130048   ;;  %v1250_v6 = vmov 0.0   ;;  %v1251_v11 = vmov 0  }
  0x1d   : > { %270 = vmatprep.subr.mxu0 %v190_v0  ;;  %975 = vmatprep.subr.mxu1 %v190_v0  ;;  %v187_v3 = vld [vmem:[%s1356_s10] sm:$0xff]  ;;  %v194_v5 = vld [vmem:[%s1599_s1 + $0x18] sm:$0xff]  ;;  %v198_v8 = vld [vmem:[%s1600_s2 + $0x10] sm:$0xff] }
  0x1e   : > { %271 = vmatpush1.msra.mxu0 %v189_v1  ;;  %977 = vmatpush1.msra.mxu1 %v189_v1  ;;  %v191_v4 = vld [vmem:[%s1599_s1] sm:$0xff]  ;;  %v192_v9 = vld [vmem:[%s1599_s1 + $0x8] sm:$0xff]  ;;  %v199_v13 = vld [vmem:[%s1600_s2 + $0x18] sm:$0xff] }
  0x1f   : > { %272 = vmatprep.subr.mxu0 %v188_v2  ;;  %976 = vmatprep.subr.mxu1 %v188_v2  ;;  %v196_v7 = vld [vmem:[%s1600_s2] sm:$0xff]  ;;  %v197_v12 = vld [vmem:[%s1600_s2 + $0x8] sm:$0xff]  ;;  %v193_v14 = vld [vmem:[%s1599_s1 + $0x10] sm:$0xff] }
  0x20   : > { %273 = vmatpush1.msra.mxu0 %v187_v3  ;;  %978 = vmatpush1.msra.mxu1 %v187_v3  ;;  %v195_v10 = vld [vmem:[%s1599_s1 + $0x20] sm:$0x1] }
  0x21   : > { %306 = vmatprep.mubr.f32.mxu0 %v1250_v6  ;;  %324 = vmatprep.mubr.f32.mxu1 %v1250_v6  ;;  %v200_v15 = vld [vmem:[%s1600_s2 + $0x20] sm:$0x1] }
  0x22   : > { %945 = vmatmul.mubr.msk.f32.vlgmr.msra.gmra.mxu0 %vm226_vm0, %v191_v4  ;;  %948 = vmatmul.mubr.msk.f32.vlgmr.msra.gmra.mxu1 %vm226_vm0, %v194_v5 }
  0x23   : > { %312 = vmatprep.mubr.f32.mxu0 %v1250_v6  ;;  %330 = vmatprep.mubr.f32.mxu1 %v1250_v6 }
  0x24   : > { %1088 = vset.pattern.permute.xlu0 %v1251_v11  ;;  %1089 = vset.pattern.permute.xlu1 %v1251_v11 }
  0x25   : > { %203 = vperm.xlu0 %1088, %v196_v7   ;;  %213 = vperm.xlu1 %1089, %v198_v8  }
  0x26   : > { %946 = vmatmul.mubr.msk.f32.gmra.mxu0 %vm226_vm0, %v192_v9  ;;  %949 = vmatmul.mubr.msk.f32.gmra.mxu1 %vm226_vm0, %v195_v10 }
  0x27   : > { %318 = vmatprep.mubr.f32.mxu0 %v1250_v6 }
  0x29   : > { %208 = vperm.xlu0 %1088, %v197_v12   ;;  %218 = vperm.xlu1 %1089, %v199_v13  }
  0x2a   : > { %947 = vmatmul.mubr.msk.f32.gmra.mxu0 %vm226_vm0, %v193_v14 }
  0x2d   : > { %223 = vperm.xlu0 %1088, %v200_v15  }
  0xa0   : > { %v204_v16 = vpop.permute.xlu0 %203  ;;  %v214_v17 = vpop.permute.xlu1 %213 }
  0xa4   : > { %v209_v18 = vpop.permute.xlu0 %208  ;;  %v219_v19 = vpop.permute.xlu1 %218 }
  0xa8   : > { %v224_v26 = vpop.permute.xlu0 %223 }
  0xe2   : > { %v308_v20 = vpop.f32.mrf.mxu0  ;;  %v326_v21 = vpop.f32.mrf.mxu1 }
  0xe3   : > { %v309_v22 = vadd.f32 %v308_v20, %v204_v16  ;;  %v327_v23 = vadd.f32 %v326_v21, %v219_v19 }
  0xe4   : > { %v310_v24 = vpop.f32.mrf.mxu0  ;;  %v328_v25 = vpop.f32.mrf.mxu1 }
  0xe5   : > { %337 = vst [vmem:[#allocation2] sm:$0xff] %v309_v22  ;;  %v311_v27 = vadd.f32 %v310_v24, %v204_v16  ;;  %v329_v28 = vadd.f32 %v328_v25, %v219_v19  ;;  %343 = vst [vmem:[#allocation2 + $0x30] sm:$0xff] %v327_v23 }
  0xe6   : > { %v314_v29 = vpop.f32.mrf.mxu0  ;;  %v332_v30 = vpop.f32.mrf.mxu1 }
  0xe7   : > { %338 = vst [vmem:[#allocation2 + $0x8] sm:$0xff] %v311_v27  ;;  %344 = vst [vmem:[#allocation2 + $0x38] sm:$0xff] %v329_v28  ;;  %v315_v31 = vadd.f32 %v314_v29, %v209_v18  ;;  %v333_v32 = vadd.f32 %v332_v30, %v224_v26 }
  0xe8   : > { %v316_v33 = vpop.f32.mrf.mxu0  ;;  %v334_v34 = vpop.f32.mrf.mxu1 }
  0xe9   : > { %339 = vst [vmem:[#allocation2 + $0x10] sm:$0xff] %v315_v31  ;;  %345 = vst [vmem:[#allocation2 + $0x40] sm:$0x1] %v333_v32  ;;  %v317_v35 = vadd.f32 %v316_v33, %v209_v18  ;;  %v335_v36 = vadd.f32 %v334_v34, %v224_v26 }
  0xea   : > { %v320_v37 = vpop.f32.mrf.mxu0 }
  0xeb   : > { %340 = vst [vmem:[#allocation2 + $0x18] sm:$0xff] %v317_v35  ;;  %346 = vst [vmem:[#allocation2 + $0x48] sm:$0x1] %v335_v36  ;;  %v321_v38 = vadd.f32 %v320_v37, %v214_v17 }
  0xec   : > { %v322_v39 = vpop.f32.mrf.mxu0 }
  0xed   : > { %341 = vst [vmem:[#allocation2 + $0x20] sm:$0xff] %v321_v38  ;;  %v323_v40 = vadd.f32 %v322_v39, %v214_v17 }
  0xef   : > { %342 = vst [vmem:[#allocation2 + $0x28] sm:$0xff] %v323_v40 }
  0xf0 PF: > { %s950_s8 = sshll.u32 %s1232_s15, 7  ;;  %v353_v42 = vld [vmem:[#allocation2 + $0x10] sm:$0xff]  ;;  %v1252_v43 = vmov 0.0   ;;  %vm393_vm1 = vcmask 64512   ;;  %s970_s24 = sshll.u32 %s1236_s16, 2 }
  0xf1   : > { %s1401_s9 = sshra.s32 %s950_s8, 7  ;;  %506 = vmatprep.mubr.f32.mxu0 %v1252_v43  ;;  %s854_s27 = sadd.s32 %s1232_s15, %s970_s24 }
  0xf2   : > { %v354_v41 = vld [vmem:[#allocation2 + $0x18] sm:$0xff]  ;;  %s951_s20 = sshll.u32 %s1401_s9, 3  ;;  %s971_s29 = sshll.u32 %s854_s27, 7 }
  0xf3   : > { %472 = vmatprep.subr.mxu0 %v354_v41  ;;  %s351_s21 = scalar_lea.vmem [#allocation2], %s951_s20  ;;  %s829_s28 = scalar_lea.vmem %s1356_s10, %s951_s20 }
  0xf4   : > { %473 = vmatpush1.msra.mxu0 %v353_v42  ;;  %s857_s5 = sshll.u32 %s1358_s11, 4  ;;  %s1539_s16 = scalar_lea.hbm %s1601_s3, %s971_s29  ;;  %s1541_s5 = int_to_ptr.vmem [resolvable:$true] %s857_s5 }
  0xf5   : > { %s1547_s15 = scalar_lea.sflag [#allocation4], %s175_s4  ;;  %s1156_s10 = scalar_lea.vmem %s1541_s5, 256 }
  0xf6   : > { %v352_v44 = vld [vmem:[%s351_s21] sm:$0xff]  ;;  %p1157_p0 = scmp.ne.s32.totalorder %s1541_s5, %s1156_s10  ;;  %s1253_s8 = smov [#allocation3]  }
  0xf7   : > { %361 = vxpose.xlu0.b32.start.end [1/1] (short) %v352_v44, 128  ;;  %s1160_s9 = sshll.u32 %s1253_s8, 4  ;;  %s1161_s9 = int_to_ptr.vmem [resolvable:$false] %s1160_s9 }
  0xf8   : > { %p1158_p1 = pnand %p1157_p0, %p1328_p3  ;;  %s1162_s20 = scalar_lea.vmem %s1161_s9, 512 }
  0xf9   : > { %p1163_p4 = scmp.lt.s32.totalorder %s1541_s5, %s1161_s9  ;;  %p1164_p5 = scmp.lt.s32.totalorder %s1162_s20, %s1156_s10 }
  0xfa   : > { %p1159_p2 = pneg %p1158_p1 }
  0xfb   : > { %p1165_p6 = por %p1164_p5, %p1163_p4 }
  0xfd   : > { %p1166_p7 = pnand %p1165_p6, %p1159_p2 }
 0x173   : > { %v377_v45 = vpop.trf.xlu0 }
 0x174   : > { %952 = vmatmul.mubr.msk.f32.vlgmr.msra.gmra.mxu0 %vm393_vm1, %v377_v45  ;;  %v358_v45 = vld [vmem:[#allocation2 + $0x38] sm:$0xff] }
 0x175   : > { %512 = vmatprep.mubr.f32.mxu0 %v1252_v43  ;;  %816 = vmatprep.mubr.f32.mxu1 %v358_v45 }
 0x177   : > { %v378_v46 = vpop.trf.xlu0 }
 0x178   : > { %953 = vmatmul.mubr.msk.f32.gmra.mxu0 %vm393_vm1, %v378_v46  ;;  %v356_v46 = vld [vmem:[#allocation2 + $0x28] sm:$0xff] }
 0x179   : > { %518 = vmatprep.mubr.f32.mxu0 %v1252_v43 }
 0x17b   : > { %v379_v47 = vpop.trf.xlu0 }
 0x17c   : > { %954 = vmatmul.mubr.msk.f32.gmra.mxu0 %vm393_vm1, %v379_v47 }
 0x17d   : > { %524 = vmatprep.mubr.f32.mxu0 %v1252_v43 }
 0x17f   : > { %v380_v48 = vpop.trf.xlu0 }
 0x180   : > { %955 = vmatmul.mubr.msk.f32.gmra.mxu0 %vm393_vm1, %v380_v48 }
 0x181   : > { %530 = vmatprep.mubr.f32.mxu0 %v1252_v43 }
 0x183   : > { %v381_v49 = vpop.trf.xlu0 }
 0x184   : > { %956 = vmatmul.mubr.msk.f32.gmra.mxu0 %vm393_vm1, %v381_v49 }
 0x185   : > { %536 = vmatprep.mubr.f32.mxu0 %v1252_v43 }
 0x187   : > { %v382_v50 = vpop.trf.xlu0 }
 0x188   : > { %957 = vmatmul.mubr.msk.f32.gmra.mxu0 %vm393_vm1, %v382_v50 }
 0x189   : > { %542 = vmatprep.mubr.f32.mxu0 %v1252_v43 }
 0x18b   : > { %v383_v51 = vpop.trf.xlu0 }
 0x18c   : > { %958 = vmatmul.mubr.msk.f32.gmra.mxu0 %vm393_vm1, %v383_v51 }
 0x18d   : > { %548 = vmatprep.mubr.f32.mxu0 %v1252_v43 }
 0x18f   : > { %v384_v52 = vpop.trf.xlu0 }
 0x190   : > { %959 = vmatmul.mubr.msk.f32.gmra.mxu0 %vm393_vm1, %v384_v52 }
 0x191   : > { %554 = vmatprep.mubr.f32.mxu0 %v1252_v43 }
 0x193   : > { %v385_v53 = vpop.trf.xlu0 }
 0x194   : > { %960 = vmatmul.mubr.msk.f32.gmra.mxu0 %vm393_vm1, %v385_v53 }
 0x195   : > { %560 = vmatprep.mubr.f32.mxu0 %v1252_v43 }
 0x197   : > { %v386_v54 = vpop.trf.xlu0 }
 0x198   : > { %961 = vmatmul.mubr.msk.f32.gmra.mxu0 %vm393_vm1, %v386_v54 }
 0x199   : > { %566 = vmatprep.mubr.f32.mxu0 %v1252_v43 }
 0x19b   : > { %v387_v55 = vpop.trf.xlu0 }
 0x19c   : > { %962 = vmatmul.mubr.msk.f32.gmra.mxu0 %vm393_vm1, %v387_v55 }
 0x19d   : > { %572 = vmatprep.mubr.f32.mxu0 %v1252_v43 }
 0x19f   : > { %v388_v56 = vpop.trf.xlu0 }
 0x1a0   : > { %963 = vmatmul.mubr.msk.f32.gmra.mxu0 %vm393_vm1, %v388_v56 }
 0x1a1   : > { %578 = vmatprep.mubr.f32.mxu0 %v1252_v43 }
 0x1a3   : > { %v389_v57 = vpop.trf.xlu0 }
 0x1a4   : > { %964 = vmatmul.mubr.msk.f32.gmra.mxu0 %vm393_vm1, %v389_v57 }
 0x1a5   : > { %584 = vmatprep.mubr.f32.mxu0 %v1252_v43 }
 0x1a7   : > { %v390_v58 = vpop.trf.xlu0 }
 0x1a8   : > { %965 = vmatmul.mubr.msk.f32.gmra.mxu0 %vm393_vm1, %v390_v58 }
 0x1a9   : > { %590 = vmatprep.mubr.f32.mxu0 %v1252_v43 }
 0x1ab   : > { %v391_v59 = vpop.trf.xlu0 }
 0x1ac   : > { %966 = vmatmul.mubr.msk.f32.gmra.mxu0 %vm393_vm1, %v391_v59 }
 0x1ad   : > { %596 = vmatprep.mubr.f32.mxu0 %v1252_v43 }
 0x1af   : > { %v392_v60 = vpop.trf.xlu0 }
 0x1b0   : > { %967 = vmatmul.mubr.msk.f32.gmra.mxu0 %vm393_vm1, %v392_v60 }
 0x1b1   : > { %811 = vmatprep.mubr.f32.mxu0 %v356_v46 }
 0x234   : > { %v1422_v61 = vpop.f32.mrf.mxu0 }
 0x236   : > { %v1424_v62 = vpop.f32.mrf.mxu0 }
 0x237   : > { %v603_v44 = vmax.f32 %v1422_v61, %v1424_v62 }
 0x238   : > { %v1426_v63 = vpop.f32.mrf.mxu0 }
 0x23a   : > { %v1428_v0 = vpop.f32.mrf.mxu0 }
 0x23b   : > { %v606_v43 = vmax.f32 %v1426_v63, %v1428_v0 }
 0x23c   : > { %v1430_v1 = vpop.f32.mrf.mxu0 }
 0x23e   : > { %v1432_v2 = vpop.f32.mrf.mxu0 }
 0x23f   : > { %v609_v42 = vmax.f32 %v1430_v1, %v1432_v2 }
 0x240   : > { %v1434_v3 = vpop.f32.mrf.mxu0 }
 0x242   : > { %v1436_v4 = vpop.f32.mrf.mxu0 }
 0x243   : > { %v612_v41 = vmax.f32 %v1434_v3, %v1436_v4 }
 0x244   : > { %v1438_v5 = vpop.f32.mrf.mxu0 }
 0x246   : > { %v1440_v6 = vpop.f32.mrf.mxu0 }
 0x247   : > { %v615_v40 = vmax.f32 %v1438_v5, %v1440_v6 }
 0x248   : > { %v1442_v7 = vpop.f32.mrf.mxu0 }
 0x24a   : > { %v1444_v8 = vpop.f32.mrf.mxu0 }
 0x24b   : > { %v618_v39 = vmax.f32 %v1442_v7, %v1444_v8 }
 0x24c   : > { %v1446_v9 = vpop.f32.mrf.mxu0 }
 0x24e   : > { %v1448_v10 = vpop.f32.mrf.mxu0 }
 0x24f   : > { %v621_v38 = vmax.f32 %v1446_v9, %v1448_v10 }
 0x250   : > { %v1450_v11 = vpop.f32.mrf.mxu0 }
 0x252   : > { %v1452_v12 = vpop.f32.mrf.mxu0 }
 0x253   : > { %v624_v37 = vmax.f32 %v1450_v11, %v1452_v12 }
 0x254   : > { %v1454_v13 = vpop.f32.mrf.mxu0 }
 0x256   : > { %v1456_v14 = vpop.f32.mrf.mxu0 }
 0x257   : > { %v627_v36 = vmax.f32 %v1454_v13, %v1456_v14 }
 0x258   : > { %v1458_v15 = vpop.f32.mrf.mxu0 }
 0x25a   : > { %v1460_v16 = vpop.f32.mrf.mxu0 }
 0x25b   : > { %v630_v35 = vmax.f32 %v1458_v15, %v1460_v16 }
 0x25c   : > { %v1462_v17 = vpop.f32.mrf.mxu0 }
 0x25e   : > { %v1464_v18 = vpop.f32.mrf.mxu0 }
 0x25f   : > { %v633_v34 = vmax.f32 %v1462_v17, %v1464_v18 }
 0x260   : > { %v1466_v19 = vpop.f32.mrf.mxu0 }
 0x262   : > { %v1468_v20 = vpop.f32.mrf.mxu0 }
 0x263   : > { %v636_v33 = vmax.f32 %v1466_v19, %v1468_v20 }
 0x264   : > { %v1470_v21 = vpop.f32.mrf.mxu0 }
 0x266   : > { %v1472_v22 = vpop.f32.mrf.mxu0 }
 0x267   : > { %v639_v32 = vmax.f32 %v1470_v21, %v1472_v22 }
 0x268   : > { %v1474_v23 = vpop.f32.mrf.mxu0 }
 0x26a   : > { %v588_v24 = vpop.f32.mrf.mxu0 }
 0x26b   : > { %v642_v30 = vmax.f32 %v1474_v23, %v588_v24 }
 0x26c   : > { %v592_v25 = vpop.f32.mrf.mxu0 }
 0x26e   : > { %v594_v26 = vpop.f32.mrf.mxu0 }
 0x26f   : > { %v645_v27 = vmax.f32 %v592_v25, %v594_v26 }
 0x270   : > { %v598_v28 = vpop.f32.mrf.mxu0 }
 0x271   : > { %646 = vmax.xlane.f32.xlu1 %v645_v27 }
 0x272   : > { %v600_v29 = vpop.f32.mrf.mxu0 }
 0x273   : > { %v648_v31 = vmax.f32 %v598_v28, %v600_v29 }
 0x275   : > { %643 = vmax.xlane.f32.xlu1 %v642_v30  ;;  %649 = vmax.xlane.f32.xlu0 %v648_v31 }
 0x279   : > { %640 = vmax.xlane.f32.xlu1 %v639_v32 }
 0x27d   : > { %637 = vmax.xlane.f32.xlu1 %v636_v33 }
 0x281   : > { %634 = vmax.xlane.f32.xlu1 %v633_v34 }
 0x285   : > { %631 = vmax.xlane.f32.xlu1 %v630_v35 }
 0x289   : > { %628 = vmax.xlane.f32.xlu1 %v627_v36 }
 0x28d   : > { %625 = vmax.xlane.f32.xlu1 %v624_v37 }
 0x291   : > { %622 = vmax.xlane.f32.xlu1 %v621_v38 }
 0x295   : > { %619 = vmax.xlane.f32.xlu1 %v618_v39 }
 0x299   : > { %616 = vmax.xlane.f32.xlu1 %v615_v40 }
 0x29d   : > { %613 = vmax.xlane.f32.xlu1 %v612_v41 }
 0x2a1   : > { %610 = vmax.xlane.f32.xlu1 %v609_v42 }
 0x2a5   : > { %607 = vmax.xlane.f32.xlu1 %v606_v43 }
 0x2a9   : > { %604 = vmax.xlane.f32.xlu1 %v603_v44 }
 0x2fa   : > { %v647_v47 = vpop.xlane.xlu1 %646 }
 0x2fb   : > { %v680_v51 = vsub.f32 %v594_v26, %v647_v47  ;;  %v679_v56 = vsub.f32 %v592_v25, %v647_v47 }
 0x2fd   : > { %v741_v57 = vmul.f32 1.442695, %v680_v51  ;;  %v739_v60 = vmul.f32 1.442695, %v679_v56 }
 0x2fe   : > { %v644_v48 = vpop.xlane.xlu1 %643  ;;  %v650_v49 = vpop.xlane.xlu0 %649 }
 0x2ff   : > { %v681_v50 = vsub.f32 %v598_v28, %v650_v49  ;;  %v682_v52 = vsub.f32 %v600_v29, %v650_v49  ;;  %v678_v58 = vsub.f32 %v588_v24, %v644_v48  ;;  %v677_v27 = vsub.f32 %v1474_v23, %v644_v48 }
 0x301   : > { %v743_v53 = vmul.f32 1.442695, %v681_v50  ;;  %v745_v54 = vmul.f32 1.442695, %v682_v52  ;;  %v737_v30 = vmul.f32 1.442695, %v678_v58 }
 0x302   : > { %v641_v55 = vpop.xlane.xlu1 %640  ;;  %v735_v26 = vmul.f32 1.442695, %v677_v27 }
 0x303   : > { %1090 = vpow2.f32 %v743_v53  ;;  %v676_v31 = vsub.f32 %v1472_v22, %v641_v55  ;;  %v675_v28 = vsub.f32 %v1470_v21, %v641_v55 }
 0x304   : > { %1092 = vpow2.f32 %v745_v54 }
 0x305   : > { %1094 = vpow2.f32 %v741_v57  ;;  %v733_v29 = vmul.f32 1.442695, %v676_v31  ;;  %v731_v33 = vmul.f32 1.442695, %v675_v28 }
 0x306   : > { %v638_v59 = vpop.xlane.xlu1 %637  ;;  %1096 = vpow2.f32 %v739_v60 }
 0x307   : > { %1098 = vpow2.f32 %v737_v30  ;;  %v674_v25 = vsub.f32 %v1468_v20, %v638_v59  ;;  %v673_v34 = vsub.f32 %v1466_v19, %v638_v59 }
 0x308   : > { %1100 = vpow2.f32 %v735_v26 }
 0x309   : > { %1102 = vpow2.f32 %v733_v29  ;;  %v729_v23 = vmul.f32 1.442695, %v674_v25  ;;  %v727_v38 = vmul.f32 1.442695, %v673_v34 }
 0x30a   : > { %v635_v32 = vpop.xlane.xlu1 %634  ;;  %1104 = vpow2.f32 %v731_v33 }
 0x30b   : > { %v672_v35 = vsub.f32 %v1464_v18, %v635_v32  ;;  %v671_v21 = vsub.f32 %v1462_v17, %v635_v32  ;;  %1106 = vpow2.f32 %v729_v23 }
 0x30c   : > { %1108 = vpow2.f32 %v727_v38 }
 0x30d   : > { %v725_v39 = vmul.f32 1.442695, %v672_v35  ;;  %v723_v18 = vmul.f32 1.442695, %v671_v21 }
 0x30e   : > { %v632_v24 = vpop.xlane.xlu1 %631 }
 0x30f   : > { %v670_v20 = vsub.f32 %v1460_v16, %v632_v24  ;;  %v669_v41 = vsub.f32 %v1458_v15, %v632_v24  ;;  %1110 = vpow2.f32 %v725_v39 }
 0x310   : > { %v1091_v36 = vpop.eup %1090  ;;  %1112 = vpow2.f32 %v723_v18 }
 0x311   : > { %v1093_v37 = vpop.eup %1092  ;;  %v721_v43 = vmul.f32 1.442695, %v670_v20  ;;  %v719_v45 = vmul.f32 1.442695, %v669_v41 }
 0x312   : > { %v629_v22 = vpop.xlane.xlu1 %628  ;;  %747 = vmatprep.subr.mxu0 %v1093_v37  ;;  %979 = vmatprep.subr.mxu1 %v1093_v37  ;;  %v1095_v40 = vpop.eup %1094 }
 0x313   : > { %748 = vmatpush1.xpose.msra.mxu0 %v1091_v36  ;;  %995 = vmatpush1.xpose.msra.mxu1 %v1091_v36  ;;  %v1097_v42 = vpop.eup %1096  ;;  %v668_v17 = vsub.f32 %v1456_v14, %v629_v22  ;;  %v667_v46 = vsub.f32 %v1454_v13, %v629_v22  ;;  %1114 = vpow2.f32 %v721_v43 }
 0x314   : > { %749 = vmatprep.subr.mxu0 %v1095_v40  ;;  %980 = vmatprep.subr.mxu1 %v1095_v40  ;;  %v1099_v44 = vpop.eup %1098  ;;  %1116 = vpow2.f32 %v719_v45 }
 0x315   : > { %v1101_v47 = vpop.eup %1100  ;;  %v717_v48 = vmul.f32 1.442695, %v668_v17  ;;  %v715_v50 = vmul.f32 1.442695, %v667_v46 }
 0x316   : > { %v626_v19 = vpop.xlane.xlu1 %625  ;;  %v1103_v49 = vpop.eup %1102 }
 0x317   : > { %750 = vmatpush1.xpose.msra.mxu0 %v1097_v42  ;;  %996 = vmatpush1.xpose.msra.mxu1 %v1097_v42  ;;  %v666_v15 = vsub.f32 %v1452_v12, %v626_v19  ;;  %v665_v51 = vsub.f32 %v1450_v11, %v626_v19  ;;  %v1105_v52 = vpop.eup %1104  ;;  %1118 = vpow2.f32 %v717_v48 }
 0x318   : > { %751 = vmatprep.subr.mxu0 %v1099_v44  ;;  %981 = vmatprep.subr.mxu1 %v1099_v44  ;;  %v1107_v54 = vpop.eup %1106  ;;  %1120 = vpow2.f32 %v715_v50  ;;  %v360_v50 = vld [vmem:[#allocation2 + $0x48] sm:$0x1] }
 0x319   : > { %v713_v53 = vmul.f32 1.442695, %v666_v15  ;;  %v711_v55 = vmul.f32 1.442695, %v665_v51  ;;  %v1109_v57 = vpop.eup %1108  ;;  %v359_v51 = vld [vmem:[#allocation2 + $0x40] sm:$0x1] }
 0x31a   : > { %v623_v16 = vpop.xlane.xlu1 %622 }
 0x31b   : > { %752 = vmatpush1.xpose.msra.mxu0 %v1101_v47  ;;  %997 = vmatpush1.xpose.msra.mxu1 %v1101_v47  ;;  %v664_v13 = vsub.f32 %v1448_v10, %v623_v16  ;;  %v663_v56 = vsub.f32 %v1446_v9, %v623_v16  ;;  %1122 = vpow2.f32 %v713_v53 }
 0x31c   : > { %753 = vmatprep.subr.mxu0 %v1103_v49  ;;  %982 = vmatprep.subr.mxu1 %v1103_v49  ;;  %v1111_v59 = vpop.eup %1110  ;;  %1124 = vpow2.f32 %v711_v55  ;;  %v357_v49 = vld [vmem:[#allocation2 + $0x30] sm:$0xff] }
 0x31d   : > { %v709_v58 = vmul.f32 1.442695, %v664_v13  ;;  %v707_v60 = vmul.f32 1.442695, %v663_v56  ;;  %v1113_v30 = vpop.eup %1112  ;;  %v832_v56 = vlaneseq }
 0x31e   : > { %v620_v14 = vpop.xlane.xlu1 %619 }
 0x31f   : > { %754 = vmatpush1.xpose.msra.mxu0 %v1105_v52  ;;  %998 = vmatpush1.xpose.msra.mxu1 %v1105_v52  ;;  %v662_v11 = vsub.f32 %v1444_v8, %v620_v14  ;;  %v661_v27 = vsub.f32 %v1442_v7, %v620_v14  ;;  %1126 = vpow2.f32 %v709_v58  ;;  %v355_v14 = vld [vmem:[#allocation2 + $0x20] sm:$0xff] }
 0x320   : > { %755 = vmatprep.subr.mxu0 %v1107_v54  ;;  %983 = vmatprep.subr.mxu1 %v1107_v54  ;;  %v1115_v32 = vpop.eup %1114  ;;  %1128 = vpow2.f32 %v707_v60  ;;  %v831_v60 = vld [vmem:[%s829_s28 + $0x10] sm:$0xff] }
 0x321   : > { %v705_v31 = vmul.f32 1.442695, %v662_v11  ;;  %v703_v26 = vmul.f32 1.442695, %v661_v27  ;;  %v1117_v29 = vpop.eup %1116 }
 0x322   : > { %v617_v12 = vpop.xlane.xlu1 %616 }
 0x323   : > { %756 = vmatpush1.xpose.msra.mxu0 %v1109_v57  ;;  %999 = vmatpush1.xpose.msra.mxu1 %v1109_v57  ;;  %v660_v9 = vsub.f32 %v1440_v6, %v617_v12  ;;  %v659_v28 = vsub.f32 %v1438_v5, %v617_v12  ;;  %1130 = vpow2.f32 %v705_v31  ;;  %v833_v57 = vshrl.u32 %v832_v56, 7 }
 0x324   : > { %757 = vmatprep.subr.mxu0 %v1111_v59  ;;  %984 = vmatprep.subr.mxu1 %v1111_v59  ;;  %v1119_v24 = vpop.eup %1118  ;;  %1132 = vpow2.f32 %v703_v26 }
 0x325   : > { %v701_v25 = vmul.f32 1.442695, %v660_v9  ;;  %v699_v6 = vmul.f32 1.442695, %v659_v28  ;;  %v1121_v23 = vpop.eup %1120  ;;  %v834_v58 = vsub.s32 0, %v833_v57 }
 0x326   : > { %v614_v10 = vpop.xlane.xlu1 %613 }
 0x327   : > { %758 = vmatpush1.xpose.msra.mxu0 %v1113_v30  ;;  %1000 = vmatpush1.xpose.msra.mxu1 %v1113_v30  ;;  %v658_v7 = vsub.f32 %v1436_v4, %v614_v10  ;;  %v657_v33 = vsub.f32 %v1434_v3, %v614_v10  ;;  %1134 = vpow2.f32 %v701_v25  ;;  %v830_v10 = vld [vmem:[%s829_s28] sm:$0xff] }
 0x328   : > { %759 = vmatprep.subr.mxu0 %v1115_v32  ;;  %985 = vmatprep.subr.mxu1 %v1115_v32  ;;  %v1123_v36 = vpop.eup %1122  ;;  %1136 = vpow2.f32 %v699_v6 }
 0x329   : > { %v697_v35 = vmul.f32 1.442695, %v658_v7  ;;  %v695_v4 = vmul.f32 1.442695, %v657_v33  ;;  %v1125_v37 = vpop.eup %1124 }
 0x32a   : > { %v611_v8 = vpop.xlane.xlu1 %610 }
 0x32b   : > { %760 = vmatpush1.xpose.msra.mxu0 %v1117_v29  ;;  %1001 = vmatpush1.xpose.msra.mxu1 %v1117_v29  ;;  %v656_v5 = vsub.f32 %v1432_v2, %v611_v8  ;;  %v655_v22 = vsub.f32 %v1430_v1, %v611_v8  ;;  %1138 = vpow2.f32 %v697_v35 }
 0x32c   : > { %761 = vmatprep.subr.mxu0 %v1119_v24  ;;  %986 = vmatprep.subr.mxu1 %v1119_v24  ;;  %v1127_v21 = vpop.eup %1126  ;;  %1140 = vpow2.f32 %v695_v4 }
 0x32d   : > { %v693_v38 = vmul.f32 1.442695, %v656_v5  ;;  %v691_v2 = vmul.f32 1.442695, %v655_v22  ;;  %v1129_v40 = vpop.eup %1128 }
 0x32e   : > { %v608_v34 = vpop.xlane.xlu1 %607 }
 0x32f   : > { %762 = vmatpush1.xpose.msra.mxu0 %v1121_v23  ;;  %1002 = vmatpush1.xpose.msra.mxu1 %v1121_v23  ;;  %v654_v3 = vsub.f32 %v1428_v0, %v608_v34  ;;  %v653_v20 = vsub.f32 %v1426_v63, %v608_v34  ;;  %1142 = vpow2.f32 %v693_v38 }
 0x330   : > { %763 = vmatprep.subr.mxu0 %v1123_v36  ;;  %987 = vmatprep.subr.mxu1 %v1123_v36  ;;  %v1131_v18 = vpop.eup %1130  ;;  %1144 = vpow2.f32 %v691_v2 }
 0x331   : > { %v689_v19 = vmul.f32 1.442695, %v654_v3  ;;  %v687_v0 = vmul.f32 1.442695, %v653_v20  ;;  %v1133_v42 = vpop.eup %1132 }
 0x332   : > { %v605_v39 = vpop.xlane.xlu1 %604 }
 0x333   : > { %764 = vmatpush1.xpose.msra.mxu0 %v1125_v37  ;;  %1003 = vmatpush1.xpose.msra.mxu1 %v1125_v37  ;;  %v652_v1 = vsub.f32 %v1424_v62, %v605_v39  ;;  %v651_v41 = vsub.f32 %v1422_v61, %v605_v39  ;;  %1146 = vpow2.f32 %v689_v19 }
 0x334   : > { %765 = vmatprep.subr.mxu0 %v1127_v21  ;;  %988 = vmatprep.subr.mxu1 %v1127_v21  ;;  %v1135_v17 = vpop.eup %1134  ;;  %1148 = vpow2.f32 %v687_v0 }
 0x335   : > { %v685_v43 = vmul.f32 1.442695, %v652_v1  ;;  %v683_v63 = vmul.f32 1.442695, %v651_v41  ;;  %v1137_v62 = vpop.eup %1136 }
 0x337   : > { %766 = vmatpush1.xpose.msra.mxu0 %v1129_v40  ;;  %1004 = vmatpush1.xpose.msra.mxu1 %v1129_v40  ;;  %1150 = vpow2.f32 %v685_v43 }
 0x338   : > { %767 = vmatprep.subr.mxu0 %v1131_v18  ;;  %989 = vmatprep.subr.mxu1 %v1131_v18  ;;  %v1139_v44 = vpop.eup %1138  ;;  %1152 = vpow2.f32 %v683_v63 }
 0x339   : > { %v1141_v16 = vpop.eup %1140 }
 0x33b   : > { %768 = vmatpush1.xpose.msra.mxu0 %v1133_v42  ;;  %1005 = vmatpush1.xpose.msra.mxu1 %v1133_v42 }
 0x33c   : > { %769 = vmatprep.subr.mxu0 %v1135_v17  ;;  %990 = vmatprep.subr.mxu1 %v1135_v17  ;;  %v1143_v61 = vpop.eup %1142 }
 0x33d   : > { %v1145_v45 = vpop.eup %1144 }
 0x33f   : > { %770 = vmatpush1.xpose.msra.mxu0 %v1137_v62  ;;  %1006 = vmatpush1.xpose.msra.mxu1 %v1137_v62 }
 0x340   : > { %771 = vmatprep.subr.mxu0 %v1139_v44  ;;  %991 = vmatprep.subr.mxu1 %v1139_v44  ;;  %v1147_v46 = vpop.eup %1146 }
 0x341   : > { %v1149_v47 = vpop.eup %1148 }
 0x343   : > { %772 = vmatpush1.xpose.msra.mxu0 %v1141_v16  ;;  %1007 = vmatpush1.xpose.msra.mxu1 %v1141_v16 }
 0x344   : > { %773 = vmatprep.subr.mxu0 %v1143_v61  ;;  %992 = vmatprep.subr.mxu1 %v1143_v61  ;;  %v1151_v48 = vpop.eup %1150 }
 0x345   : > { %v1153_v15 = vpop.eup %1152 }
 0x347   : > { %774 = vmatpush1.xpose.msra.mxu0 %v1145_v45  ;;  %1008 = vmatpush1.xpose.msra.mxu1 %v1145_v45 }
 0x348   : > { %775 = vmatprep.subr.mxu0 %v1147_v46  ;;  %993 = vmatprep.subr.mxu1 %v1147_v46 }
 0x34b   : > { %776 = vmatpush1.xpose.msra.mxu0 %v1149_v47  ;;  %1009 = vmatpush1.xpose.msra.mxu1 %v1149_v47 }
 0x34c   : > { %777 = vmatprep.subr.mxu0 %v1151_v48  ;;  %994 = vmatprep.subr.mxu1 %v1151_v48 }
 0x34f   : > { %778 = vmatpush1.xpose.msra.mxu0 %v1153_v15  ;;  %1010 = vmatpush1.xpose.msra.mxu1 %v1153_v15 }
 0x352   : > { %817 = vmatmul.mubr.f32.vlgmr.msra.gmra.mxu1 %v357_v49  ;;  %812 = vmatmul.mubr.f32.vlgmr.msra.gmra.mxu0 %v355_v14 }
 0x353   : > { %821 = vmatprep.mubr.f32.mxu1 %v360_v50 }
 0x356   : > { %822 = vmatmul.mubr.f32.gmra.mxu1 %v359_v51 }
 0x412   : > { %v818_v52 = vpop.f32.mrf.mxu1  ;;  %v813_v53 = vpop.f32.mrf.mxu0 }
 0x414   : > { %v820_v13 = vpop.f32.mrf.mxu1  ;;  %v815_v54 = vpop.f32.mrf.mxu0 }
 0x416   : > { %v823_v12 = vpop.f32.mrf.mxu1 }
 0x417   : > { %1154 = vrcp.f32 %v823_v12 }
 0x418   : > { %v825_v55 = vpop.f32.mrf.mxu1 }
 0x424   : > { %v1155_v11 = vpop.eup %1154 }
 0x425   : > { %v835_v59 = vrot.slane %v1155_v11, %v834_v58 }
 0x427   : > { %v836_v27 = vmul.f32 %v835_v59, %v813_v53  ;;  %v837_v30 = vmul.f32 %v835_v59, %v818_v52 }
 0x429   : > { %v838_v31 = vadd.f32 %v836_v27, %v830_v10  ;;  %v839_v9 = vadd.f32 %v837_v30, %v831_v60 }
 0x42b   : > { %840 = vst [vmem:[%s1358_s11] sm:$0xff] %v838_v31  ;;  %841 = vst [vmem:[%s1358_s11 + $0x8] sm:$0xff] %v839_v9 }
 0x42c   : > { %1169 = shalt.err (!%p1166_p7)
}
 0x42d   : > { %s1170_s4 = scalar_lea.hbm %s1539_s16, 256  ;;  %s1174_s24 = scalar_lea.hbm %s1601_s3, 1024 }
 0x42e   : > { %p1171_p9 = scmp.ne.s32.totalorder %s1539_s16, %s1170_s4  ;;  %p1175_p12 = scmp.lt.s32.totalorder %s1539_s16, %s1601_s3 }
 0x42f   : > { %p1176_p13 = scmp.lt.s32.totalorder %s1174_s24, %s1170_s4 }
 0x430   : > { %p1172_p10 = pnand %p1171_p9, %p1328_p3 }
 0x431   : > { %p1177_p0 = por %p1176_p13, %p1175_p12 }
 0x432   : > { %p1173_p11 = pneg %p1172_p10 }
 0x434   : > { %p1178_p1 = pnand %p1177_p0, %p1173_p11 }
 0x436   : > { %1181 = shalt.err (!%p1178_p1)
}
 0x437   : > { %s1254_s29 = smov 128   ;;  %s1255_s6 = smov 256  }
 0x438   : > { %s1256_s7 = smov 8  }
 0x439   : > { %1011 = dma.vmem_to_hbm [thread:$0]  (%p1328_p3), %s1541_s5, 256, %s1539_s16, %s1547_s15, %s1254_s29, %s1255_s6, %s1256_s7  }
 0x43a PF: > { %p1017_p2 = scmp.ge.s32.totalorder %s1248_s19, 2  ;;  %s872_s10 = sand.u32 1, %s1220_s12  }
 0x43b   : > { %s873_s8 = scalar_lea.sflag [#allocation4], %s872_s10 }
 0x43c   : > { %p1014_p4 = pnand %p1017_p2, %p1337_p8 }
 0x43e   : > { %p1015_p5 = pneg %p1014_p4 }
 0x440   : > { %1215 = dma.done.wait (%p1015_p5), %s873_s8, 256  }
 0x441   : > { %1217 = vsyncadd (%p1015_p5), %s873_s8, 4294967040  ;;  %s16_s19 = sadd.s32 1, %s1248_s19   ;;  %s1604_s12 = smov %s1224_s13 }
 0x442   : > { %p13_p6 = scmp.ge.s32.totalorder %s16_s19, 6   ;;  %s1605_s13 = smov %s1228_s14 }
 0x443   : > { %s1606_s14 = smov %s1346_s30  ;;  %s1607_s15 = smov %s1240_s17 }
 0x444   : > { %s1608_s16 = smov %s1244_s18  ;;  %s1609_s17 = smov %s1612_s22 }
 0x445   : > { %s1610_s18 = smov %s1616_s23  ;;  %15 = sbr.rel (!%p13_p6) target bundleno = 5 (0x5), region = 73 }
 0x44a   :  { %878 = vsyncpa [#allocation4], 1 }
 0x44b   :  { %880 = vsyncpa [#allocation4 + $0x1], 1 }

</bundles_post_ra>
